<compile_context>
chip_gen: v7x
topology: tpu7x:2x2x1
jax: 0.10.0
libtpu: 0.0.40
codegen_flags: <defaults>
</compile_context>

<pallas_src>
import jax
import jax.numpy as jnp
from jax import lax
from jax.experimental import pallas as pl
from jax.experimental.pallas import tpu as pltpu

EPS = 1e-5


def _round_up(n, m):
    return ((n + m - 1) // m) * m


def _sublane_pack(itemsize):
    return {4: 8, 2: 16, 1: 32}.get(itemsize, 8)


def _vmem_limit_bytes():
    """Generation-aware scoped-VMEM limit (leave headroom below physical)."""
    phys = 128 * 1024 * 1024
    try:
        info = pltpu.get_tpu_info()
        phys = int(getattr(info, "vmem_capacity_bytes", phys)) or phys
    except Exception:
        pass
    # 96 MiB on 128-MiB chips (v5e/v6e), ~48 MiB on 64-MiB v7x.
    return min(96 * 1024 * 1024, (phys * 3) // 4)


def _choose_tm(rows, d, itemsize, budget):
    """Row tile sized against the real per-step VMEM working set."""
    pack = _sublane_pack(itemsize)
    # Per-row cost of one grid step:
    #   2 inputs + 1 output, each double-buffered  -> 6 * d * itemsize
    #   ~2 full-tile f32 temporaries in the body   -> 2 * d * 4
    per_row = 6 * d * itemsize + 2 * d * 4
    tm = max(pack, (budget // per_row) // pack * pack)
    tm = min(tm, _round_up(rows, pack))
    # Keep enough grid steps for DMA/compute overlap (>= 4 per TensorCore on
    # v7x once megacore shards the parallel axis), but never shrink a block
    # below ~1 MiB — small blocks lose to the ~0.35 us per-step overhead.
    MIN_STEPS = 8
    MIN_BLOCK_BYTES = 1 << 20
    while ((-(-rows // tm)) < MIN_STEPS and tm > pack
           and tm * d * itemsize > MIN_BLOCK_BYTES):
        tm = max(pack, (tm // 2) // pack * pack)
    return tm


def _addnorm_kernel(x_ref, y_ref, g_ref, b_ref, o_ref):
    # x_ref/y_ref/o_ref: (tm, d) tile; g_ref/b_ref: (1, d) f32.
    s = x_ref[...].astype(jnp.float32) + y_ref[...].astype(jnp.float32)
    mean = jnp.mean(s, axis=-1, keepdims=True)
    c = s - mean
    var = jnp.mean(c * c, axis=-1, keepdims=True)   # two-pass: matches torch
    inv = lax.rsqrt(var + EPS)
    o_ref[...] = ((c * inv) * g_ref[...] + b_ref[...]).astype(o_ref.dtype)


def add_norm(x, x_updated, gamma, beta, *, use_norm=True):
    """x, x_updated: (..., model_dim). gamma/beta: (model_dim,)."""
    if not use_norm:
        # Trivial path — plain residual add, no norm kernel needed.
        return x + x_updated

    orig_shape = x.shape
    d = orig_shape[-1]
    out_dtype = x.dtype
    itemsize = jnp.dtype(out_dtype).itemsize

    x2 = x.reshape(-1, d)
    y2 = x_updated.reshape(-1, d)
    rows = x2.shape[0]

    # gamma/beta in f32 so the kernel does no per-tile casts (tiny arrays).
    g2 = gamma.astype(jnp.float32).reshape(1, d)
    b2 = beta.astype(jnp.float32).reshape(1, d)

    vmem_limit = _vmem_limit_bytes()
    tm = _choose_tm(rows, d, itemsize, (vmem_limit * 3) // 5)
    grid = (pl.cdiv(rows, tm),)

    out = pl.pallas_call(
        _addnorm_kernel,
        out_shape=jax.ShapeDtypeStruct((rows, d), out_dtype),
        grid_spec=pltpu.PrefetchScalarGridSpec(
            num_scalar_prefetch=0,
            grid=grid,
            in_specs=[
                pl.BlockSpec((tm, d), lambda i: (i, 0)),
                pl.BlockSpec((tm, d), lambda i: (i, 0)),
                pl.BlockSpec((1, d), lambda i: (0, 0)),
                pl.BlockSpec((1, d), lambda i: (0, 0)),
            ],
            out_specs=pl.BlockSpec((tm, d), lambda i: (i, 0)),
        ),
        compiler_params=pltpu.CompilerParams(
            dimension_semantics=("parallel",),
            vmem_limit_bytes=vmem_limit,
        ),
    )(x2, y2, g2, b2)

    return out.reshape(orig_shape)


if __name__ == "__main__":
    # Small shapes consistent with the module: batch=2, seq=8, model_dim=32.
    B, S, D = 2, 8, 32
    key = jax.random.PRNGKey(0)
    k1, k2 = jax.random.split(key)
    x = jax.random.normal(k1, (B, S, D), dtype=jnp.float32)
    x_updated = jax.random.normal(k2, (B, S, D), dtype=jnp.float32)

    # torch.nn.LayerNorm default init: gamma=1, beta=0.
    gamma = jnp.ones((D,), dtype=jnp.float32)
    beta = jnp.zeros((D,), dtype=jnp.float32)

    out = add_norm(x, x_updated, gamma, beta, use_norm=True)
    out = jax.block_until_ready(out)

    # Pure-JAX reference check.
    s = x + x_updated
    mean = jnp.mean(s, axis=-1, keepdims=True)
    var = jnp.mean((s - mean) ** 2, axis=-1, keepdims=True)
    ref = (s - mean) / jnp.sqrt(var + EPS) * gamma + beta
    assert jnp.allclose(out, ref, atol=1e-4, rtol=1e-5), "mismatch vs reference"

    print("KERNEL_OK")
</pallas_src>

<mosaic_0001>
module attributes {stable_mosaic.version = 11 : i64} {
  func.func @_addnorm_kernel(%arg0: i32, %arg1: memref<16x32xf32, #tpu.memory_space<vmem>>, %arg2: memref<16x32xf32, #tpu.memory_space<vmem>>, %arg3: memref<1x32xf32, #tpu.memory_space<vmem>>, %arg4: memref<1x32xf32, #tpu.memory_space<vmem>>, %arg5: memref<16x32xf32, #tpu.memory_space<vmem>>) attributes {dimension_semantics = [#tpu.dimension_semantics<parallel>], iteration_bounds = array<i64: 1>, scalar_prefetch = 0 : i64, scratch_operands = 0 : i64, tpu.core_type = #tpu.core_type<tc>, window_params = [{transform_indices = @transform_0, window_bounds = array<i64: 16, 32>}, {transform_indices = @transform_1, window_bounds = array<i64: 16, 32>}, {pipeline_mode = #tpu.pipeline_mode<synchronous>, transform_indices = @transform_2, window_bounds = array<i64: 1, 32>}, {pipeline_mode = #tpu.pipeline_mode<synchronous>, transform_indices = @transform_3, window_bounds = array<i64: 1, 32>}, {transform_indices = @transform_4, window_bounds = array<i64: 16, 32>}]} {
    %c0 = arith.constant 0 : index
    %c0_0 = arith.constant 0 : index
    %0 = vector.load %arg1[%c0, %c0_0] : memref<16x32xf32, #tpu.memory_space<vmem>>, vector<16x32xf32>
    %c0_1 = arith.constant 0 : index
    %c0_2 = arith.constant 0 : index
    %1 = vector.load %arg2[%c0_1, %c0_2] : memref<16x32xf32, #tpu.memory_space<vmem>>, vector<16x32xf32>
    %2 = arith.addf %0, %1 : vector<16x32xf32>
    %cst = arith.constant dense<0.000000e+00> : vector<16xf32>
    %3 = vector.multi_reduction <add>, %2, %cst [1] : vector<16x32xf32> to vector<16xf32>
    %4 = vector.shape_cast %3 : vector<16xf32> to vector<16x1xf32>
    %cst_3 = arith.constant 3.200000e+01 : f32
    %5 = vector.broadcast %cst_3 : f32 to vector<16x1xf32>
    %6 = arith.divf %4, %5 : vector<16x1xf32>
    %7 = vector.broadcast %6 : vector<16x1xf32> to vector<16x32xf32>
    %8 = arith.subf %2, %7 : vector<16x32xf32>
    %9 = arith.mulf %8, %8 : vector<16x32xf32>
    %cst_4 = arith.constant dense<0.000000e+00> : vector<16xf32>
    %10 = vector.multi_reduction <add>, %9, %cst_4 [1] : vector<16x32xf32> to vector<16xf32>
    %11 = vector.shape_cast %10 : vector<16xf32> to vector<16x1xf32>
    %cst_5 = arith.constant 3.200000e+01 : f32
    %12 = vector.broadcast %cst_5 : f32 to vector<16x1xf32>
    %13 = arith.divf %11, %12 : vector<16x1xf32>
    %cst_6 = arith.constant 9.99999974E-6 : f32
    %14 = vector.broadcast %cst_6 : f32 to vector<16x1xf32>
    %15 = arith.addf %13, %14 : vector<16x1xf32>
    %16 = math.rsqrt %15 : vector<16x1xf32>
    %17 = vector.broadcast %16 : vector<16x1xf32> to vector<16x32xf32>
    %18 = arith.mulf %8, %17 : vector<16x32xf32>
    %c0_7 = arith.constant 0 : index
    %c0_8 = arith.constant 0 : index
    %19 = vector.load %arg3[%c0_7, %c0_8] : memref<1x32xf32, #tpu.memory_space<vmem>>, vector<1x32xf32>
    %20 = vector.broadcast %19 : vector<1x32xf32> to vector<16x32xf32>
    %21 = arith.mulf %18, %20 : vector<16x32xf32>
    %c0_9 = arith.constant 0 : index
    %c0_10 = arith.constant 0 : index
    %22 = vector.load %arg4[%c0_9, %c0_10] : memref<1x32xf32, #tpu.memory_space<vmem>>, vector<1x32xf32>
    %23 = vector.broadcast %22 : vector<1x32xf32> to vector<16x32xf32>
    %24 = arith.addf %21, %23 : vector<16x32xf32>
    %c0_11 = arith.constant 0 : index
    %c0_12 = arith.constant 0 : index
    %25 = vector.load %arg5[%c0_11, %c0_12] : memref<16x32xf32, #tpu.memory_space<vmem>>, vector<16x32xf32>
    tpu.vector_store %arg5[%c0_11, %c0_12], %24 {strides = array<i32>} : memref<16x32xf32, #tpu.memory_space<vmem>>, vector<16x32xf32>,
    return
  }
  func.func @transform_0(%arg0: i32) -> (i32, i32) {
    %c0_i32 = arith.constant 0 : i32
    %c0_i32_0 = arith.constant 0 : i32
    return %arg0, %c0_i32 : i32, i32
  }
  func.func @transform_1(%arg0: i32) -> (i32, i32) {
    %c0_i32 = arith.constant 0 : i32
    %c0_i32_0 = arith.constant 0 : i32
    return %arg0, %c0_i32 : i32, i32
  }
  func.func @transform_2(%arg0: i32) -> (i32, i32) {
    %c0_i32 = arith.constant 0 : i32
    %c0_i32_0 = arith.constant 0 : i32
    %c0_i32_1 = arith.constant 0 : i32
    return %c0_i32, %c0_i32_0 : i32, i32
  }
  func.func @transform_3(%arg0: i32) -> (i32, i32) {
    %c0_i32 = arith.constant 0 : i32
    %c0_i32_0 = arith.constant 0 : i32
    %c0_i32_1 = arith.constant 0 : i32
    return %c0_i32, %c0_i32_0 : i32, i32
  }
  func.func @transform_4(%arg0: i32) -> (i32, i32) {
    %c0_i32 = arith.constant 0 : i32
    %c0_i32_0 = arith.constant 0 : i32
    return %arg0, %c0_i32 : i32, i32
  }
}

</mosaic_0001>

<bundles_post_ra>
// kernel: tpu_custom_call.1
= control target key start
LH: loop header
LB: loop body
LE: loop exit
PB: predicated region body
PF: predicated region fallthrough
CT: control target
= control target key end

     0   :  { %9 = vsyncpa [#allocation3], 0  ;;  %s387_s0 = inlined_call_operand.hbm [shape: f32[16,32], index: 0, kind: input, shape index: {}]   ;;  %s388_s1 = inlined_call_operand.hbm [shape: f32[16,32], index: 1, kind: input, shape index: {}]   ;;  %s389_s2 = inlined_call_operand.hbm [shape: f32[1,32], index: 2, kind: input, shape index: {}]   ;;  %s390_s3 = inlined_call_operand.hbm [shape: f32[1,32], index: 3, kind: input, shape index: {}]   ;;  %s391_s4 = inlined_call_operand.hbm [shape: f32[16,32], index: 4, kind: output, shape index: {}]  }
   0x1   :  { %10 = vsyncpa [#allocation6], 0 }
   0x2   :  { %11 = vsyncpa [#allocation9], 0 }
   0x3   :  { %12 = vsyncpa [#allocation4], 0  ;;  %s273_s15 = smov [#allocation5]   ;;  %s274_s17 = smov [#allocation2]  }
   0x4   :  { %s30_s16 = sshll.u32 %s273_s15, 4  ;;  %s18_s18 = sshll.u32 %s274_s17, 4  ;;  %s31_s16 = int_to_ptr.vmem [resolvable:$true] %s30_s16  ;;  %s305_s18 = int_to_ptr.vmem [resolvable:$true] %s18_s18 }
   0x5   :  { %s155_s21 = scalar_lea.hbm %s388_s1, 256 }
   0x6   :  { %p156_p0 = scmp.ne.s32.totalorder %s388_s1, %s155_s21  ;;  %p159_p1 = scmp.lt.u32.totalorder %s155_s21, %s388_s1 }
   0x8   :  { %p161_p2 = pnand %p159_p1, %p156_p0 }
   0xa   :  { %164 = shalt.err (!%p161_p2)
}
   0xb   :  { %s165_s26 = scalar_lea.vmem %s31_s16, 256  ;;  %p170_p4 = scmp.lt.s32.totalorder %s31_s16, %s31_s16 }
   0xc   :  { %p166_p3 = scmp.ne.s32.totalorder %s31_s16, %s165_s26  ;;  %p171_p5 = scmp.lt.s32.totalorder %s165_s26, %s165_s26 }
   0xe   :  { %p172_p6 = por %p171_p5, %p170_p4 }
  0x10   :  { %p173_p7 = pnand %p172_p6, %p166_p3 }
  0x12   :  { %176 = shalt.err (!%p173_p7)
}
  0x13   :  { %s275_s27 = smov 128   ;;  %s276_s28 = smov 8  }
  0x14   :  { %36 = dma.hbm_to_vmem [thread:$0]  %s388_s1, 256, %s31_s16, [#allocation6], %s275_s27, %s275_s27, %s276_s28  }
  0x15   :  { %s177_s7 = scalar_lea.hbm %s387_s0, 256 }
  0x16   :  { %p178_p8 = scmp.ne.s32.totalorder %s387_s0, %s177_s7  ;;  %p181_p9 = scmp.lt.u32.totalorder %s177_s7, %s387_s0 }
  0x18   :  { %p183_p10 = pnand %p181_p9, %p178_p8 }
  0x1a   :  { %186 = shalt.err (!%p183_p10)
}
  0x1b   :  { %s187_s12 = scalar_lea.vmem %s305_s18, 256  ;;  %p192_p12 = scmp.lt.s32.totalorder %s305_s18, %s305_s18 }
  0x1c   :  { %p188_p11 = scmp.ne.s32.totalorder %s305_s18, %s187_s12  ;;  %p193_p13 = scmp.lt.s32.totalorder %s187_s12, %s187_s12 }
  0x1e   :  { %p194_p0 = por %p193_p13, %p192_p12 }
  0x20   :  { %p195_p1 = pnand %p194_p0, %p188_p11 }
  0x22   :  { %198 = shalt.err (!%p195_p1)
}
  0x23   :  { %24 = dma.hbm_to_vmem [thread:$0]  %s387_s0, 256, %s305_s18, [#allocation3], %s275_s27, %s275_s27, %s276_s28  }
  0x24   :  { %s277_s14 = smov [#allocation7]   ;;  %s278_s16 = smov [#allocation8]  }
  0x25   :  { %s43_s15 = sshll.u32 %s277_s14, 4  ;;  %s53_s17 = sshll.u32 %s278_s16, 4  ;;  %s44_s15 = int_to_ptr.vmem [resolvable:$true] %s43_s15  ;;  %s54_s17 = int_to_ptr.vmem [resolvable:$true] %s53_s17 }
  0x26   :  { %s199_s21 = scalar_lea.hbm %s389_s2, 16 }
  0x27   :  { %p200_p2 = scmp.ne.s32.totalorder %s389_s2, %s199_s21  ;;  %p203_p3 = scmp.lt.u32.totalorder %s199_s21, %s389_s2 }
  0x29   :  { %p205_p4 = pnand %p203_p3, %p200_p2 }
  0x2b   :  { %208 = shalt.err (!%p205_p4)
}
  0x2c   :  { %s209_s0 = scalar_lea.vmem %s44_s15, 16  ;;  %s213_s18 = scalar_lea.vmem %s44_s15, 32 }
  0x2d   :  { %p210_p5 = scmp.ne.s32.totalorder %s44_s15, %s209_s0  ;;  %p214_p6 = scmp.lt.s32.totalorder %s44_s15, %s44_s15 }
  0x2e   :  { %p215_p7 = scmp.lt.s32.totalorder %s213_s18, %s209_s0 }
  0x30   :  { %p216_p8 = por %p215_p7, %p214_p6 }
  0x32   :  { %p217_p9 = pnand %p216_p8, %p210_p5 }
  0x34   :  { %220 = shalt.err (!%p217_p9)
}
  0x35   :  { %46 = dma.hbm_to_vmem [thread:$0]  %s389_s2, 16, %s44_s15, [#allocation6]  }
  0x36   :  { %s221_s6 = scalar_lea.hbm %s390_s3, 16 }
  0x37   :  { %p222_p10 = scmp.ne.s32.totalorder %s390_s3, %s221_s6  ;;  %p225_p11 = scmp.lt.u32.totalorder %s221_s6, %s390_s3 }
  0x39   :  { %p227_p12 = pnand %p225_p11, %p222_p10 }
  0x3b   :  { %230 = shalt.err (!%p227_p12)
}
  0x3c   :  { %s231_s11 = scalar_lea.vmem %s54_s17, 16  ;;  %s235_s12 = scalar_lea.vmem %s54_s17, 32 }
  0x3d   :  { %p232_p13 = scmp.ne.s32.totalorder %s54_s17, %s231_s11  ;;  %p236_p0 = scmp.lt.s32.totalorder %s54_s17, %s54_s17 }
  0x3e   :  { %p237_p1 = scmp.lt.s32.totalorder %s235_s12, %s231_s11 }
  0x40   :  { %p238_p2 = por %p237_p1, %p236_p0 }
  0x42   :  { %p239_p3 = pnand %p238_p2, %p232_p13 }
  0x44   :  { %242 = shalt.err (!%p239_p3)
}
  0x45   :  { %56 = dma.hbm_to_vmem [thread:$0]  %s390_s3, 16, %s54_s17, [#allocation9]  }
  0x46   :  { %265 = dma.done.wait [#allocation3], 256  }
  0x47   :  { %266 = vsyncadd [#allocation3], 4294967040 }
  0x48   :  { %267 = dma.done.wait [#allocation6], 272  }
  0x49   :  { %268 = vsyncadd [#allocation6], 4294967024 }
  0x4a   :  { %269 = dma.done.wait [#allocation9], 16  }
  0x4b   :  { %270 = vsyncadd [#allocation9], 4294967280  ;;  %v69_v0 = vld [vmem:[#allocation2] sm:$0xff]  ;;  %v71_v1 = vld [vmem:[#allocation5] sm:$0xff]  ;;  %vm75_vm0 = vcmask 261120   ;;  %s279_s3 = smov [#allocation10]  }
  0x4c   :  { %v70_v2 = vld [vmem:[#allocation2 + $0x8] sm:$0xff]  ;;  %v73_v3 = vadd.f32 %v71_v1, %v69_v0  ;;  %v72_v4 = vld [vmem:[#allocation5 + $0x8] sm:$0xff]  ;;  %v142_v25 = vld [vmem:[#allocation7] ss:$0 sm:$0xff]  ;;  %s128_s13 = sshll.u32 %s279_s3, 4  ;;  %s129_s13 = int_to_ptr.vmem [resolvable:$true] %s128_s13 }
  0x4d   :  { %v74_v5 = vadd.f32 %v72_v4, %v70_v2  ;;  %v143_v27 = vld [vmem:[#allocation8] ss:$0 sm:$0xff]  ;;  %s243_s14 = scalar_lea.vmem %s129_s13, 256  ;;  %p248_p5 = scmp.lt.s32.totalorder %s129_s13, %s129_s13 }
  0x4e   :  { %v76_v6 = vsel %vm75_vm0, %v73_v3, 0.0  ;;  %p244_p4 = scmp.ne.s32.totalorder %s129_s13, %s243_s14  ;;  %p249_p6 = scmp.lt.s32.totalorder %s243_s14, %s243_s14 }
  0x4f   :  { %77 = vadd.xlane.f32.xlu0 %v76_v6  ;;  %v79_v7 = vsel %vm75_vm0, %v74_v5, 0.0 }
  0x50   :  { %p250_p7 = por %p249_p6, %p248_p5 }
  0x52   :  { %p251_p8 = pnand %p250_p7, %p244_p4 }
  0x53   :  { %80 = vadd.xlane.f32.xlu0 %v79_v7 }
  0xdc   :  { %v78_v8 = vpop.xlane.xlu0 %77 }
  0xdd   :  { %v83_v9 = vmul.f32 0.03125, %v78_v8 }
  0xdf   :  { %v85_v10 = vsub.f32 %v73_v3, %v83_v9 }
  0xe0   :  { %v81_v11 = vpop.xlane.xlu0 %80 }
  0xe1   :  { %v84_v12 = vmul.f32 0.03125, %v81_v11  ;;  %v87_v13 = vmul.f32 %v85_v10, %v85_v10 }
  0xe3   :  { %v86_v14 = vsub.f32 %v74_v5, %v84_v12  ;;  %v89_v15 = vsel %vm75_vm0, %v87_v13, 0.0 }
  0xe4   :  { %90 = vadd.xlane.f32.xlu1 %v89_v15 }
  0xe5   :  { %v88_v16 = vmul.f32 %v86_v14, %v86_v14 }
  0xe7   :  { %v92_v17 = vsel %vm75_vm0, %v88_v16, 0.0 }
  0xe8   :  { %93 = vadd.xlane.f32.xlu1 %v92_v17 }
 0x171   :  { %v91_v18 = vpop.xlane.xlu1 %90 }
 0x172   :  { %v95_v19 = vmul.f32 0.03125, %v91_v18 }
 0x174   :  { %v97_v20 = vadd.f32 1e-05, %v95_v19 }
 0x175   :  { %v94_v21 = vpop.xlane.xlu1 %93 }
 0x176   :  { %151 = vrsqrt.f32 %v97_v20  ;;  %v96_v22 = vmul.f32 0.03125, %v94_v21 }
 0x178   :  { %v98_v23 = vadd.f32 1e-05, %v96_v22 }
 0x17a   :  { %153 = vrsqrt.f32 %v98_v23 }
 0x180   :  { %v152_v24 = vpop.eup %151 }
 0x181   :  { %v101_v26 = vmul.f32 %v152_v24, %v85_v10 }
 0x183   :  { %v110_v28 = vmul.f32 %v142_v25, %v101_v26 }
 0x184   :  { %v154_v29 = vpop.eup %153 }
 0x185   :  { %v102_v30 = vmul.f32 %v154_v29, %v86_v14  ;;  %v119_v31 = vadd.f32 %v143_v27, %v110_v28 }
 0x187   :  { %v111_v32 = vmul.f32 %v142_v25, %v102_v30  ;;  %121 = vst.msk [vmem:[#allocation10] sm:$0xff] %vm75_vm0, %v119_v31 }
 0x189   :  { %v120_v33 = vadd.f32 %v143_v27, %v111_v32 }
 0x18b   :  { %122 = vst.msk [vmem:[#allocation10 + $0x8] sm:$0xff] %vm75_vm0, %v120_v33 }
 0x18c   :  { %254 = shalt.err (!%p251_p8)
}
 0x18d   :  { %s255_s17 = scalar_lea.hbm %s391_s4, 256 }
 0x18e   :  { %p256_p9 = scmp.ne.s32.totalorder %s391_s4, %s255_s17  ;;  %p259_p10 = scmp.lt.u32.totalorder %s255_s17, %s391_s4 }
 0x190   :  { %p261_p11 = pnand %p259_p10, %p256_p9 }
 0x192   :  { %264 = shalt.err (!%p261_p11)
}
 0x193   :  { %134 = dma.vmem_to_hbm [thread:$0]  %s129_s13, 256, %s391_s4, [#allocation4], %s275_s27, %s275_s27, %s276_s28  }
 0x194   :  { %271 = dma.done.wait [#allocation4], 256  }
 0x195   :  { %272 = vsyncadd [#allocation4], 4294967040 }
 0x196   :  { %138 = vsyncpa [#allocation3], 1 }
 0x197   :  { %139 = vsyncpa [#allocation6], 1 }
 0x198   :  { %140 = vsyncpa [#allocation9], 1 }
 0x199   :  { %141 = vsyncpa [#allocation4], 1 }

</bundles_post_ra>
